<compile_context>
chip_gen: v5e
topology: v5e:2x2
jax: 0.10.0
libtpu: 0.0.40
codegen_flags: <defaults>
</compile_context>

<pallas_src>
import functools

import jax
import jax.numpy as jnp
from jax.experimental import pallas as pl
from jax.experimental.pallas import tpu as pltpu

_SUBLANE = 8
_MAX_BLOCK_M = 8192       # rows per batch tile; footprint at the cap is only a few MiB
_SPLIT_THRESHOLD = 1024   # above this, split into >=4 tiles so v7x's 2 TCs both work


def _round_up(x, m):
    return (x + m - 1) // m * m


def _qnet_kernel(x_ref, w1_ref, b1_ref, w2_ref, b2_ref, w3_ref, b3_ref, o_ref):
    """Fused MLP forward for one batch tile: 3 MXU matmuls + bias + ReLU.

    Weights/biases stay VMEM-resident across the grid (constant index_maps);
    only the state tile streams in and the Q tile streams out.
    """
    cdt = w1_ref.dtype  # compute dtype of the dots (f32 or bf16); accumulation is f32
    x = x_ref[...]
    h1 = jnp.dot(x, w1_ref[...], preferred_element_type=jnp.float32) + b1_ref[...]
    h1 = jnp.maximum(h1, 0.0)
    h2 = jnp.dot(h1.astype(cdt), w2_ref[...], preferred_element_type=jnp.float32) + b2_ref[...]
    h2 = jnp.maximum(h2, 0.0)
    q = jnp.dot(h2.astype(cdt), w3_ref[...], preferred_element_type=jnp.float32) + b3_ref[...]
    o_ref[...] = q.astype(o_ref.dtype)


@functools.partial(jax.jit, static_argnames=("block_m", "use_bf16"))
def qnetwork_forward(state, params, *, block_m=None, use_bf16=False):
    """state: (B, state_dim) f32. params: dict of w1,b1,w2,b2,w3,b3.

    block_m=None picks the tile automatically:
      * B <= 1024: whole batch in one tile (minimizes step overhead).
      * B  > 1024: aim for >=4 grid steps (v7x megacore sharding), capped at 8192
        rows per tile so huge batches still amortize per-step overhead.
    use_bf16=True streams state/weights as bf16 (halved input DMA, native MXU path);
    bias/ReLU/output remain f32.
    """
    B, state_dim = state.shape
    hidden = params["w1"].shape[1]
    action_dim = params["w3"].shape[1]

    # ---- batch tile selection (static: shapes are static under jit) --------
    if block_m is None:
        if B <= _SPLIT_THRESHOLD:
            block_m = max(_round_up(B, _SUBLANE), _SUBLANE)
        else:
            block_m = min(_MAX_BLOCK_M, _round_up(pl.cdiv(B, 4), _SUBLANE))
    else:
        block_m = max(_round_up(min(block_m, _MAX_BLOCK_M), _SUBLANE), _SUBLANE)

    # Ragged batches: no pad/slice copies — Pallas clips the edge tile.
    grid = (pl.cdiv(B, block_m),)

    cdt = jnp.bfloat16 if use_bf16 else jnp.float32
    itemsize = jnp.dtype(cdt).itemsize

    x = state.astype(cdt)
    w1 = params["w1"].astype(cdt)
    w2 = params["w2"].astype(cdt)
    w3 = params["w3"].astype(cdt)
    b1 = params["b1"].reshape(1, hidden).astype(jnp.float32)
    b2 = params["b2"].reshape(1, hidden).astype(jnp.float32)
    b3 = params["b3"].reshape(1, action_dim).astype(jnp.float32)

    # ---- scheduler hint: this kernel is HBM/overhead-bound, not MXU-bound --
    flops = 2 * B * (state_dim * hidden + hidden * hidden + hidden * action_dim)
    w_bytes = (state_dim * hidden + hidden * hidden + hidden * action_dim) * itemsize
    b_bytes = (2 * hidden + action_dim) * 4
    bytes_accessed = B * state_dim * itemsize + B * action_dim * 4 + w_bytes + b_bytes
    cost = pl.CostEstimate(flops=flops, transcendentals=0, bytes_accessed=bytes_accessed)

    # ---- explicit VMEM limit only if the tile outgrows the scoped default --
    vmem_est = (
        2 * block_m * state_dim * itemsize   # double-buffered state tile
        + 2 * block_m * action_dim * 4       # double-buffered output tile
        + 2 * block_m * hidden * 4           # h1/h2 temporaries
        + 2 * (w_bytes + b_bytes)            # resident params (double-buffered)
    )
    compiler_kwargs = {}
    if vmem_est > 24 * 1024 * 1024:
        # leave headroom; 48 MiB is safe even on v7x (64 MiB physical)
        compiler_kwargs["vmem_limit_bytes"] = min(int(vmem_est * 3 // 2), 48 * 1024 * 1024)

    out = pl.pallas_call(
        _qnet_kernel,
        out_shape=jax.ShapeDtypeStruct((B, action_dim), jnp.float32),
        grid_spec=pltpu.PrefetchScalarGridSpec(
            num_scalar_prefetch=0,
            grid=grid,
            in_specs=[
                # streaming batch tile of the state
                pl.BlockSpec((block_m, state_dim), lambda i: (i, 0)),
                # weights/biases: small, full blocks, resident across the grid
                pl.BlockSpec((state_dim, hidden), lambda i: (0, 0)),
                pl.BlockSpec((1, hidden), lambda i: (0, 0)),
                pl.BlockSpec((hidden, hidden), lambda i: (0, 0)),
                pl.BlockSpec((1, hidden), lambda i: (0, 0)),
                pl.BlockSpec((hidden, action_dim), lambda i: (0, 0)),
                pl.BlockSpec((1, action_dim), lambda i: (0, 0)),
            ],
            # unpadded, exact output slab: full last dim satisfies the (8,128) rule
            out_specs=pl.BlockSpec((block_m, action_dim), lambda i: (i, 0)),
        ),
        compiler_params=pltpu.CompilerParams(
            dimension_semantics=("parallel",),  # batch tiles shard across TCs (v7x)
            **compiler_kwargs,
        ),
        cost_estimate=cost,
    )(x, w1, b1, w2, b2, w3, b3)
    return out


def init_qnetwork_params(key, state_dim, action_dim, hidden=64):
    """Deterministic PyTorch-style init: U(-1/sqrt(fan_in), 1/sqrt(fan_in))."""
    keys = jax.random.split(key, 6)

    def lin(kw, kb, fan_in, fan_out):
        bound = 1.0 / jnp.sqrt(jnp.float32(fan_in))
        w = jax.random.uniform(kw, (fan_in, fan_out), jnp.float32, -bound, bound)
        b = jax.random.uniform(kb, (fan_out,), jnp.float32, -bound, bound)
        return w, b

    w1, b1 = lin(keys[0], keys[1], state_dim, hidden)
    w2, b2 = lin(keys[2], keys[3], hidden, hidden)
    w3, b3 = lin(keys[4], keys[5], hidden, action_dim)
    return {"w1": w1, "b1": b1, "w2": w2, "b2": b2, "w3": w3, "b3": b3}


def qnetwork_reference(state, params):
    """Plain-JAX reference matching the PyTorch forward."""
    h = jnp.maximum(state @ params["w1"] + params["b1"], 0.0)
    h = jnp.maximum(h @ params["w2"] + params["b2"], 0.0)
    return h @ params["w3"] + params["b3"]


if __name__ == "__main__":
    key = jax.random.PRNGKey(0)
    k_params, k_s1, k_s2, k_s3 = jax.random.split(key, 4)

    state_dim, action_dim, hidden = 16, 8, 64
    params = init_qnetwork_params(k_params, state_dim, action_dim, hidden=hidden)

    # Case 1: ragged small batch, single tile, auto block_m (edge-clipped read/write).
    b1 = 10
    s1 = jax.random.normal(k_s1, (b1, state_dim), jnp.float32)
    q1 = jax.block_until_ready(qnetwork_forward(s1, params))
    ref1 = qnetwork_reference(s1, params)
    assert q1.shape == (b1, action_dim)
    assert jnp.allclose(q1, ref1, atol=1e-5, rtol=1e-5), "mismatch vs reference (case 1)"

    # Case 2: multi-tile grid with a partial edge tile (52 = 3*16 + 4 rows).
    b2 = 52
    s2 = jax.random.normal(k_s2, (b2, state_dim), jnp.float32)
    q2 = jax.block_until_ready(qnetwork_forward(s2, params, block_m=16))
    ref2 = qnetwork_reference(s2, params)
    assert q2.shape == (b2, action_dim)
    assert jnp.allclose(q2, ref2, atol=1e-5, rtol=1e-5), "mismatch vs reference (case 2)"

    # Case 3: bf16 streaming path (halved input DMA); looser tolerance vs f32 reference.
    b3 = 48
    s3 = jax.random.normal(k_s3, (b3, state_dim), jnp.float32)
    q3 = jax.block_until_ready(qnetwork_forward(s3, params, block_m=16, use_bf16=True))
    ref3 = qnetwork_reference(s3, params)
    assert q3.shape == (b3, action_dim)
    assert jnp.allclose(q3, ref3, atol=1e-1, rtol=1e-1), "mismatch vs reference (case 3, bf16)"

    print("KERNEL_OK")
</pallas_src>

<mosaic_0001>
module attributes {stable_mosaic.version = 11 : i64} {
  func.func @_qnet_kernel(%arg0: i32, %arg1: memref<16x16xf32, #tpu.memory_space<vmem>>, %arg2: memref<16x64xf32, #tpu.memory_space<vmem>>, %arg3: memref<1x64xf32, #tpu.memory_space<vmem>>, %arg4: memref<64x64xf32, #tpu.memory_space<vmem>>, %arg5: memref<1x64xf32, #tpu.memory_space<vmem>>, %arg6: memref<64x8xf32, #tpu.memory_space<vmem>>, %arg7: memref<1x8xf32, #tpu.memory_space<vmem>>, %arg8: memref<16x8xf32, #tpu.memory_space<vmem>>) attributes {dimension_semantics = [#tpu.dimension_semantics<parallel>], iteration_bounds = array<i64: 1>, scalar_prefetch = 0 : i64, scratch_operands = 0 : i64, tpu.core_type = #tpu.core_type<tc>, window_params = [{transform_indices = @transform_0, window_bounds = array<i64: 16, 16>}, {pipeline_mode = #tpu.pipeline_mode<synchronous>, transform_indices = @transform_1, window_bounds = array<i64: 16, 64>}, {pipeline_mode = #tpu.pipeline_mode<synchronous>, transform_indices = @transform_2, window_bounds = array<i64: 1, 64>}, {pipeline_mode = #tpu.pipeline_mode<synchronous>, transform_indices = @transform_3, window_bounds = array<i64: 64, 64>}, {pipeline_mode = #tpu.pipeline_mode<synchronous>, transform_indices = @transform_4, window_bounds = array<i64: 1, 64>}, {pipeline_mode = #tpu.pipeline_mode<synchronous>, transform_indices = @transform_5, window_bounds = array<i64: 64, 8>}, {pipeline_mode = #tpu.pipeline_mode<synchronous>, transform_indices = @transform_6, window_bounds = array<i64: 1, 8>}, {transform_indices = @transform_7, window_bounds = array<i64: 16, 8>}]} {
    %c0 = arith.constant 0 : index
    %c0_0 = arith.constant 0 : index
    %0 = vector.load %arg1[%c0, %c0_0] : memref<16x16xf32, #tpu.memory_space<vmem>>, vector<16x16xf32>
    %c0_1 = arith.constant 0 : index
    %c0_2 = arith.constant 0 : index
    %1 = vector.load %arg2[%c0_1, %c0_2] : memref<16x64xf32, #tpu.memory_space<vmem>>, vector<16x64xf32>
    %cst = arith.constant dense<0.000000e+00> : vector<16x64xf32>
    %2 = tpu.matmul %0, %1, %cst {dimension_numbers = #tpu.dot_dimension_numbers<[1], [0], [0], [1], [0, 0, 1, 1], [], []>} : vector<16x16xf32>, vector<16x64xf32>, vector<16x64xf32> -> vector<16x64xf32>
    %c0_3 = arith.constant 0 : index
    %c0_4 = arith.constant 0 : index
    %3 = vector.load %arg3[%c0_3, %c0_4] : memref<1x64xf32, #tpu.memory_space<vmem>>, vector<1x64xf32>
    %4 = vector.broadcast %3 : vector<1x64xf32> to vector<16x64xf32>
    %5 = arith.addf %2, %4 : vector<16x64xf32>
    %cst_5 = arith.constant 0.000000e+00 : f32
    %6 = vector.broadcast %cst_5 : f32 to vector<16x64xf32>
    %7 = arith.maximumf %5, %6 : vector<16x64xf32>
    %c0_6 = arith.constant 0 : index
    %c0_7 = arith.constant 0 : index
    %8 = vector.load %arg4[%c0_6, %c0_7] : memref<64x64xf32, #tpu.memory_space<vmem>>, vector<64x64xf32>
    %cst_8 = arith.constant dense<0.000000e+00> : vector<16x64xf32>
    %9 = tpu.matmul %7, %8, %cst_8 {dimension_numbers = #tpu.dot_dimension_numbers<[1], [0], [0], [1], [0, 0, 1, 1], [], []>} : vector<16x64xf32>, vector<64x64xf32>, vector<16x64xf32> -> vector<16x64xf32>
    %c0_9 = arith.constant 0 : index
    %c0_10 = arith.constant 0 : index
    %10 = vector.load %arg5[%c0_9, %c0_10] : memref<1x64xf32, #tpu.memory_space<vmem>>, vector<1x64xf32>
    %11 = vector.broadcast %10 : vector<1x64xf32> to vector<16x64xf32>
    %12 = arith.addf %9, %11 : vector<16x64xf32>
    %cst_11 = arith.constant 0.000000e+00 : f32
    %13 = vector.broadcast %cst_11 : f32 to vector<16x64xf32>
    %14 = arith.maximumf %12, %13 : vector<16x64xf32>
    %c0_12 = arith.constant 0 : index
    %c0_13 = arith.constant 0 : index
    %15 = vector.load %arg6[%c0_12, %c0_13] : memref<64x8xf32, #tpu.memory_space<vmem>>, vector<64x8xf32>
    %cst_14 = arith.constant dense<0.000000e+00> : vector<16x8xf32>
    %16 = tpu.matmul %14, %15, %cst_14 {dimension_numbers = #tpu.dot_dimension_numbers<[1], [0], [0], [1], [0, 0, 1, 1], [], []>} : vector<16x64xf32>, vector<64x8xf32>, vector<16x8xf32> -> vector<16x8xf32>
    %c0_15 = arith.constant 0 : index
    %c0_16 = arith.constant 0 : index
    %17 = vector.load %arg7[%c0_15, %c0_16] : memref<1x8xf32, #tpu.memory_space<vmem>>, vector<1x8xf32>
    %18 = vector.broadcast %17 : vector<1x8xf32> to vector<16x8xf32>
    %19 = arith.addf %16, %18 : vector<16x8xf32>
    %c0_17 = arith.constant 0 : index
    %c0_18 = arith.constant 0 : index
    %20 = vector.load %arg8[%c0_17, %c0_18] : memref<16x8xf32, #tpu.memory_space<vmem>>, vector<16x8xf32>
    tpu.vector_store %arg8[%c0_17, %c0_18], %19 {strides = array<i32>} : memref<16x8xf32, #tpu.memory_space<vmem>>, vector<16x8xf32>,
    return
  }
  func.func @transform_0(%arg0: i32) -> (i32, i32) {
    %c0_i32 = arith.constant 0 : i32
    %c0_i32_0 = arith.constant 0 : i32
    return %arg0, %c0_i32 : i32, i32
  }
  func.func @transform_1(%arg0: i32) -> (i32, i32) {
    %c0_i32 = arith.constant 0 : i32
    %c0_i32_0 = arith.constant 0 : i32
    %c0_i32_1 = arith.constant 0 : i32
    return %c0_i32, %c0_i32_0 : i32, i32
  }
  func.func @transform_2(%arg0: i32) -> (i32, i32) {
    %c0_i32 = arith.constant 0 : i32
    %c0_i32_0 = arith.constant 0 : i32
    %c0_i32_1 = arith.constant 0 : i32
    return %c0_i32, %c0_i32_0 : i32, i32
  }
  func.func @transform_3(%arg0: i32) -> (i32, i32) {
    %c0_i32 = arith.constant 0 : i32
    %c0_i32_0 = arith.constant 0 : i32
    %c0_i32_1 = arith.constant 0 : i32
    return %c0_i32, %c0_i32_0 : i32, i32
  }
  func.func @transform_4(%arg0: i32) -> (i32, i32) {
    %c0_i32 = arith.constant 0 : i32
    %c0_i32_0 = arith.constant 0 : i32
    %c0_i32_1 = arith.constant 0 : i32
    return %c0_i32, %c0_i32_0 : i32, i32
  }
  func.func @transform_5(%arg0: i32) -> (i32, i32) {
    %c0_i32 = arith.constant 0 : i32
    %c0_i32_0 = arith.constant 0 : i32
    %c0_i32_1 = arith.constant 0 : i32
    return %c0_i32, %c0_i32_0 : i32, i32
  }
  func.func @transform_6(%arg0: i32) -> (i32, i32) {
    %c0_i32 = arith.constant 0 : i32
    %c0_i32_0 = arith.constant 0 : i32
    %c0_i32_1 = arith.constant 0 : i32
    return %c0_i32, %c0_i32_0 : i32, i32
  }
  func.func @transform_7(%arg0: i32) -> (i32, i32) {
    %c0_i32 = arith.constant 0 : i32
    %c0_i32_0 = arith.constant 0 : i32
    return %arg0, %c0_i32 : i32, i32
  }
}

</mosaic_0001>

<bundles_post_ra>
// kernel: qnetwork_forward.1
= control target key start
LH: loop header
LB: loop body
LE: loop exit
PB: predicated region body
PF: predicated region fallthrough
CT: control target
= control target key end

     0   :  { %12 = vsyncpa [#allocation3], 0  ;;  %s392_s0 = inlined_call_operand.hbm [shape: f32[10,16], index: 0, kind: input, shape index: {}]   ;;  %s393_s1 = inlined_call_operand.hbm [shape: f32[16,64], index: 1, kind: input, shape index: {}]   ;;  %s394_s2 = inlined_call_operand.vmem [shape: f32[1,64], index: 2, kind: input, shape index: {}]   ;;  %s395_s3 = inlined_call_operand.vmem [shape: f32[64,64], index: 3, kind: input, shape index: {}]   ;;  %s396_s4 = inlined_call_operand.vmem [shape: f32[1,64], index: 4, kind: input, shape index: {}]   ;;  %s397_s5 = inlined_call_operand.vmem [shape: f32[64,8], index: 5, kind: input, shape index: {}]   ;;  %s398_s6 = inlined_call_operand.vmem [shape: f32[1,8], index: 6, kind: input, shape index: {}]   ;;  %s399_s7 = inlined_call_operand.vmem [shape: f32[10,8], index: 7, kind: output, shape index: {}]  }
   0x1   :  { %s18_s26 = sshll.u32 %s392_s0, 4  ;;  %s19_s26 = int_to_ptr.hbm [resolvable:$true] %s18_s26 }
   0x2   :  { %13 = vsyncpa [#allocation5], 0  ;;  %s273_s27 = smov [#allocation2]   ;;  %s31_s8 = sshll.u32 %s393_s1, 4  ;;  %s32_s8 = int_to_ptr.hbm [resolvable:$true] %s31_s8 }
   0x3   :  { %s20_s28 = sshll.u32 %s273_s27, 4  ;;  %s274_s9 = smov 128   ;;  %s21_s28 = int_to_ptr.vmem [resolvable:$true] %s20_s28 }
   0x4   :  { %s275_s10 = smov 8   ;;  %s276_s11 = smov [#allocation4]  }
   0x5   :  { %26 = dma.hbm_to_vmem [thread:$0]  %s19_s26, 256, %s21_s28, [#allocation3], %s274_s9, %s274_s9, %s275_s10  }
   0x6   :  { %s33_s12 = sshll.u32 %s276_s11, 4  ;;  %s34_s12 = int_to_ptr.vmem [resolvable:$true] %s33_s12 }
   0x7   :  { %39 = dma.hbm_to_vmem [thread:$0]  %s32_s8, 256, %s34_s12, [#allocation5], %s274_s9, %s274_s9, %s275_s10  }
   0x8   :  { %269 = dma.done.wait [#allocation3], 256  }
   0x9   :  { %270 = vsyncadd [#allocation3], 4294967040 }
   0xa   :  { %271 = dma.done.wait [#allocation5], 256  }
   0xb   :  { %272 = vsyncadd [#allocation5], 4294967040  ;;  %v61_v0 = vld [vmem:[#allocation4 + $0x8] sm:$0xff]  ;;  %v60_v1 = vld [vmem:[#allocation4] sm:$0xff]  ;;  %vm66_vm0 = vcmask 130048   ;;  %vm110_vm1 = vcmask 523264  }
   0xc   :  { %87 = vmatpush.msra.mxu0 %v61_v0  ;;  %v58_v2 = vld [vmem:[#allocation2] sm:$0xff]  ;;  %v105_v3 = vld [vmem:[%s395_s3 + $0x38] sm:$0xff]  ;;  %v104_v4 = vld [vmem:[%s395_s3 + $0x30] sm:$0xff]  ;;  %vm183_vm2 = vcmask 64512  }
   0xd   :  { %125 = vmatpush.msra.mxu1 %v105_v3  ;;  %198 = vmatpush.msra.mxu3 %v105_v3  ;;  %v103_v5 = vld [vmem:[%s395_s3 + $0x28] sm:$0xff]  ;;  %v102_v6 = vld [vmem:[%s395_s3 + $0x20] sm:$0xff]  ;;  %v101_v7 = vld [vmem:[%s395_s3 + $0x18] sm:$0xff] }
   0xe   :  { %88 = vmatpush.msra.mxu0 %v60_v1  ;;  %v59_v8 = vld [vmem:[#allocation2 + $0x8] sm:$0xff]  ;;  %v100_v9 = vld [vmem:[%s395_s3 + $0x10] sm:$0xff]  ;;  %v98_v11 = vld [vmem:[%s395_s3] sm:$0xff] }
   0xf   :  { %192 = vmatmul.msk.f32.vlgmr.msra.gmra.mxu0 %vm66_vm0, %v58_v2  ;;  %126 = vmatpush.msra.mxu1 %v104_v4  ;;  %v99_v10 = vld [vmem:[%s395_s3 + $0x8] sm:$0xff]  ;;  %v149_v12 = vld [vmem:[%s397_s5 + $0x38] sm:$0xff]  ;;  %v148_v13 = vld [vmem:[%s397_s5 + $0x30] sm:$0xff] }
  0x10   :  { %199 = vmatpush.msra.mxu3 %v104_v4  ;;  %168 = vmatpush.msrb.mxu0 %v149_v12  ;;  %v147_v14 = vld [vmem:[%s397_s5 + $0x28] sm:$0xff]  ;;  %v146_v15 = vld [vmem:[%s397_s5 + $0x20] sm:$0xff]  ;;  %v145_v16 = vld [vmem:[%s397_s5 + $0x18] sm:$0xff] }
  0x11   :  { %127 = vmatpush.msra.mxu1 %v103_v5  ;;  %206 = vmatpush.msra.mxu2 %v149_v12  ;;  %v218_v17 = vld [vmem:[%s394_s2] ss:$0 sm:$0xff]  ;;  %v144_v24 = vld [vmem:[%s397_s5 + $0x10] sm:$0xff]  ;;  %v143_v25 = vld [vmem:[%s397_s5 + $0x8] sm:$0xff] }
  0x12   :  { %200 = vmatpush.msra.mxu3 %v103_v5  ;;  %169 = vmatpush.msrb.mxu0 %v148_v13  ;;  %v142_v26 = vld [vmem:[%s397_s5] sm:$0xff] }
  0x13   :  { %128 = vmatpush.msra.mxu1 %v102_v6  ;;  %207 = vmatpush.msra.mxu2 %v148_v13  ;;  %v219_v27 = vld [vmem:[%s396_s4] ss:$0 sm:$0xff] }
  0x14   :  { %201 = vmatpush.msra.mxu3 %v102_v6  ;;  %170 = vmatpush.msrb.mxu0 %v147_v14  ;;  %v220_v34 = vld [vmem:[%s398_s6] ss:$0 sm:$0xff] }
  0x15   :  { %129 = vmatpush.msra.mxu1 %v101_v7  ;;  %208 = vmatpush.msra.mxu2 %v147_v14 }
  0x16   :  { %202 = vmatpush.msra.mxu3 %v101_v7  ;;  %171 = vmatpush.msrb.mxu0 %v146_v15 }
  0x17   :  { %193 = vmatmul.msk.f32.gmra.mxu0 %vm66_vm0, %v59_v8  ;;  %130 = vmatpush.msra.mxu1 %v100_v9 }
  0x18   :  { %203 = vmatpush.msra.mxu3 %v100_v9  ;;  %209 = vmatpush.msra.mxu2 %v146_v15 }
  0x19   :  { %131 = vmatpush.msra.mxu1 %v99_v10  ;;  %172 = vmatpush.msrb.mxu0 %v145_v16 }
  0x1a   :  { %204 = vmatpush.msra.mxu3 %v99_v10  ;;  %210 = vmatpush.msra.mxu2 %v145_v16 }
  0x1b   :  { %132 = vmatpush.msra.mxu1 %v98_v11  ;;  %173 = vmatpush.msrb.mxu0 %v144_v24 }
  0x1c   :  { %205 = vmatpush.msra.mxu3 %v98_v11  ;;  %211 = vmatpush.msra.mxu2 %v144_v24 }
  0x1d   :  { %174 = vmatpush.msrb.mxu0 %v143_v25 }
  0x1e   :  { %212 = vmatpush.msra.mxu2 %v143_v25 }
  0x1f   :  { %175 = vmatpush.msrb.mxu0 %v142_v26 }
  0x20   :  { %213 = vmatpush.msra.mxu2 %v142_v26 }
  0x8c   :  { %v90_v18 = vpop.f32.mrf.mxu0 }
  0x8d   :  { %v91_v19 = vadd.f32 %v218_v17, %v90_v18 }
  0x8f   :  { %v96_v20 = vmax.f32 %v91_v19, 0.0 }
  0x91   :  { %194 = vmatmul.msk.f32.vlgmr.msra.gmra.mxu1 %vm110_vm1, %v96_v20 }
  0x94   :  { %v93_v21 = vpop.f32.mrf.mxu0 }
  0x95   :  { %v94_v22 = vadd.f32 %v218_v17, %v93_v21 }
  0x97   :  { %v97_v23 = vmax.f32 %v94_v22, 0.0 }
  0x99   :  { %195 = vmatmul.msk.f32.vlgmr.msra.gmra.mxu3 %vm110_vm1, %v97_v23 }
 0x10e   :  { %v134_v28 = vpop.f32.mrf.mxu1 }
 0x10f   :  { %v135_v29 = vadd.f32 %v219_v27, %v134_v28 }
 0x111   :  { %v140_v30 = vmax.f32 %v135_v29, 0.0 }
 0x113   :  { %196 = vmatmul.msk.f32.vlgmr.msrb.gmra.mxu0 %vm110_vm1, %v140_v30 }
 0x11c   :  { %v137_v31 = vpop.f32.mrf.mxu3 }
 0x11d   :  { %v138_v32 = vadd.f32 %v219_v27, %v137_v31 }
 0x11f   :  { %v141_v33 = vmax.f32 %v138_v32, 0.0 }
 0x121   :  { %197 = vmatmul.msk.f32.vlgmr.msra.gmra.mxu2 %vm110_vm1, %v141_v33 }
 0x190   :  { %v177_v35 = vpop.f32.mrf.mxu0 }
 0x191   :  { %v178_v36 = vadd.f32 %v220_v34, %v177_v35 }
 0x193   :  { %184 = vst.msk [vmem:[%s399_s7] sm:$0xff] %vm183_vm2, %v178_v36 }
 0x1a4   :  { %v180_v37 = vpop.f32.mrf.mxu2 }
 0x1a5   :  { %v181_v38 = vadd.f32 %v220_v34, %v180_v37 }
 0x1a7   :  { %185 = vst.msk [vmem:[%s399_s7 + $0x8] sm:$0xff] %vm183_vm2, %v181_v38 }
 0x1a8   :  { %190 = vsyncpa [#allocation3], 1 }
 0x1a9   :  { %191 = vsyncpa [#allocation5], 1 }

</bundles_post_ra>
